<compile_context>
chip_gen: v7x
topology: tpu7x:2x2x1
jax: 0.10.0
libtpu: 0.0.40
codegen_flags: <defaults>
</compile_context>

<pallas_src>
import numpy as np
import jax
import jax.numpy as jnp
from jax.experimental import pallas as pl
from jax.experimental.pallas import tpu as pltpu


# ----------------------------- schedule (glue) ------------------------------
def cosine_beta_schedule(timesteps, s=0.008):
    steps = timesteps + 1
    x = np.linspace(0, steps, steps)
    alphas_cumprod = np.cos(((x / steps) + s) / (1 + s) * np.pi * 0.5) ** 2
    alphas_cumprod = alphas_cumprod / alphas_cumprod[0]
    betas = 1.0 - (alphas_cumprod[1:] / alphas_cumprod[:-1])
    return np.clip(betas, 0.0, 0.999)


# ------------------------------ tile selection -------------------------------
def _pick_row_tile(Rp, C):
    """Rows per grid step: multiple of 8, divides Rp, batch elements never
    straddle a row group (RB % C == 0) unless there is a single group."""
    if Rp <= 64:
        return Rp
    for cand in range(64, 7, -8):
        if Rp % cand == 0 and cand % C == 0:
            return cand
    return Rp


def _pick_lane_tile(HW, RB, itemsize):
    """Lane tile over H*W: multiple of 128 dividing HW, sized so each x block
    is ~1 MiB (amortizes ~0.35us/step overhead) while 2 inputs x 2 pipeline
    buffers stay comfortably inside 32 MiB scoped VMEM (v7x-safe)."""
    target_bytes = 1 << 20
    max_t = max(128, (target_bytes // max(1, RB * itemsize)) // 128 * 128)
    max_t = min(max_t, 16384)          # keep the unrolled lane reduction sane
    if HW <= max_t:
        return HW
    for cand in range(max_t, 127, -128):
        if HW % cand == 0:
            return cand
    return 128


class GaussianDiffusionPallas:
    def __init__(self, *, image_size, channels=3, timesteps=1000, loss_type="l2"):
        self.channels = channels
        self.image_size = image_size
        self.loss_type = loss_type
        betas = cosine_beta_schedule(timesteps)
        alphas = 1.0 - betas
        alphas_cumprod = np.cumprod(alphas, axis=0)
        self.num_timesteps = int(betas.shape[0])
        self.sqrt_alphas_cumprod = jnp.asarray(
            np.sqrt(alphas_cumprod), dtype=jnp.float32)
        self.sqrt_one_minus_alphas_cumprod = jnp.asarray(
            np.sqrt(1.0 - alphas_cumprod), dtype=jnp.float32)

        # TODO(synk): the original module never defines self.denoise_fn (it is
        # an external U-Net). A deterministic 1x1-conv + time-scaled-bias
        # stand-in (compile-time constants) is used so the full
        # q_sample -> denoise -> loss hot path runs inside the kernel.
        C = channels
        w = 0.5 * np.eye(C, dtype=np.float32)
        w += 0.01 * np.arange(C * C, dtype=np.float32).reshape(C, C) / (C * C)
        self._w_np = w.astype(np.float32)                       # (C, C)
        self._b_np = (0.1 * np.arange(C, dtype=np.float32))     # (C,)

    # --------------------------- Pallas kernel -------------------------------
    def _build_loss_call(self, Rp, HW, RB, T, x_dtype):
        G0, G1 = Rp // RB, HW // T
        nchunks = T // 128
        use_l1 = (self.loss_type == "l1")

        def kernel(coef_ref, w_ref, x_ref, n_ref, out_ref):
            coef = coef_ref[...]                       # (RB, 128) f32
            a = coef[:, 0:1]                           # sqrt_alphas_cumprod[t]
            s = coef[:, 1:2]                           # sqrt_1m_alphas_cumprod[t]
            btn = coef[:, 2:3]                         # bias[c] * t / T

            # DMA native dtype, upcast in VMEM (v5e has no bf16 VALU).
            x = x_ref[...].astype(jnp.float32)         # (RB, T)
            noise = n_ref[...].astype(jnp.float32)     # (RB, T)

            # q_sample
            x_noisy = a * x + s * noise

            # denoise_fn stand-in: block-diagonal 1x1 conv over channels,
            # a single tiny MXU matmul (no per-row slices / concatenate).
            recon = jnp.dot(w_ref[...], x_noisy,
                            preferred_element_type=jnp.float32) + btn

            diff = noise - recon
            err = jnp.abs(diff) if use_l1 else diff * diff   # (RB, T)

            # Lane-chunked partial reduction -> one lane-dense (RB, 128) store.
            partial = err[:, 0:128]
            for ck in range(1, nchunks):
                partial = partial + err[:, ck * 128:(ck + 1) * 128]
            out_ref[...] = partial

        grid_spec = pltpu.PrefetchScalarGridSpec(
            num_scalar_prefetch=0,
            grid=(G0, G1),
            in_specs=[
                pl.BlockSpec((RB, 128), lambda i, j: (i, 0)),   # fused coefs
                pl.BlockSpec((RB, RB), lambda i, j: (i, 0)),    # block-diag W
                pl.BlockSpec((RB, T), lambda i, j: (i, j)),     # x rows
                pl.BlockSpec((RB, T), lambda i, j: (i, j)),     # noise rows
            ],
            out_specs=pl.BlockSpec((RB, 128), lambda i, j: (i, j)),
        )

        return pl.pallas_call(
            kernel,
            grid_spec=grid_spec,
            out_shape=jax.ShapeDtypeStruct((G0 * RB, G1 * 128), jnp.float32),
            compiler_params=pltpu.CompilerParams(
                dimension_semantics=("parallel", "parallel"),
                vmem_limit_bytes=32 * 1024 * 1024),
        )

    # --------------------------- loss (kernel path) --------------------------
    def p_losses(self, x, t, noise):
        B, C, H, W = x.shape
        assert C == self.channels
        HW = H * W
        assert HW % 128 == 0, "H*W must be a multiple of the 128-lane width"
        # TODO(synk): pad/mask the lane axis to support H*W not divisible by 128.

        R = B * C
        Rp = -(-R // 8) * 8                                   # pad rows to 8
        RB = _pick_row_tile(Rp, C)
        T = _pick_lane_tile(HW, RB, jnp.dtype(x.dtype).itemsize)
        G0 = Rp // RB

        a = self.sqrt_alphas_cumprod[t]                       # (B,)
        s = self.sqrt_one_minus_alphas_cumprod[t]             # (B,)
        t_norm = t.astype(jnp.float32) / float(self.num_timesteps)
        bias = jnp.asarray(self._b_np)                        # (C,)

        # Per-row (row = b*C + c) coefficients, fused into one (Rp, 128) block.
        a_col = jnp.repeat(a, C)
        s_col = jnp.repeat(s, C)
        btn_col = (t_norm[:, None] * bias[None, :]).reshape(R)
        coef = jnp.stack([a_col, s_col, btn_col], axis=1).astype(jnp.float32)
        coef = jnp.pad(coef, ((0, Rp - R), (0, 128 - coef.shape[1])))

        # Per-row-group block-diagonal channel-mix weights (compile-time).
        W_groups = np.zeros((G0, RB, RB), np.float32)
        for r in range(R):
            g, lr = divmod(r, RB)
            b, c_out = divmod(r, C)
            for c_in in range(C):
                W_groups[g, lr, b * C + c_in - g * RB] = self._w_np[c_out, c_in]
        w_rows = jnp.asarray(W_groups.reshape(G0 * RB, RB))

        # Keep native dtype (no wrapper-side upcast); pad rows with zeros
        # (padded rows have zero coef/weights/noise -> contribute 0).
        x_rows = jnp.pad(x.reshape(R, HW), ((0, Rp - R), (0, 0)))
        n_rows = jnp.pad(noise.reshape(R, HW), ((0, Rp - R), (0, 0)))

        loss_fn = self._build_loss_call(Rp, HW, RB, T, x_rows.dtype)
        partials = loss_fn(coef, w_rows, x_rows, n_rows)
        return jnp.sum(partials) / float(R * HW)

    # --------------------------- pure-JAX reference ---------------------------
    def p_losses_ref(self, x, t, noise):
        B, C, H, W = x.shape
        a = self.sqrt_alphas_cumprod[t].reshape(B, 1, 1, 1)
        s = self.sqrt_one_minus_alphas_cumprod[t].reshape(B, 1, 1, 1)
        xf = x.astype(jnp.float32)
        nf = noise.astype(jnp.float32)
        x_noisy = a * xf + s * nf
        recon = jnp.einsum("oc,bchw->bohw", jnp.asarray(self._w_np), x_noisy)
        t_norm = t.astype(jnp.float32) / float(self.num_timesteps)
        recon = recon + (t_norm[:, None] * jnp.asarray(self._b_np)[None, :]
                         ).reshape(B, C, 1, 1)
        diff = nf - recon
        if self.loss_type == "l1":
            return jnp.mean(jnp.abs(diff))
        return jnp.mean(diff * diff)

    # ------------------------------ forward -----------------------------------
    def forward(self, x, key):
        """x: (B, C, H, W) (NCHW, matching PyTorch). Returns scalar loss."""
        B = x.shape[0]
        key_t, key_n = jax.random.split(key)
        t = jax.random.randint(key_t, (B,), 0, self.num_timesteps)
        noise = jax.random.normal(key_n, x.shape, dtype=x.dtype)
        return self.p_losses(x, t, noise)


if __name__ == "__main__":
    B, C, H, W = 2, 4, 16, 16
    key = jax.random.PRNGKey(0)
    key_x, key_t, key_n = jax.random.split(key, 3)

    x = jax.random.normal(key_x, (B, C, H, W), dtype=jnp.float32)

    model = GaussianDiffusionPallas(image_size=H, channels=C,
                                    timesteps=1000, loss_type="l2")

    # Kernel vs pure-JAX reference with identical t / noise.
    t = jax.random.randint(key_t, (B,), 0, model.num_timesteps)
    noise = jax.random.normal(key_n, x.shape, dtype=x.dtype)

    loss = jax.block_until_ready(model.p_losses(x, t, noise))
    loss_ref = jax.block_until_ready(model.p_losses_ref(x, t, noise))

    assert loss.shape == () and bool(jnp.isfinite(loss))
    assert bool(jnp.allclose(loss, loss_ref, rtol=1e-3, atol=1e-5)), (loss, loss_ref)

    # Full forward path (internally drawn t / noise), as in the module.
    loss_fwd = jax.block_until_ready(model.forward(x, jax.random.PRNGKey(1)))
    assert loss_fwd.shape == () and bool(jnp.isfinite(loss_fwd))

    print("KERNEL_OK")
</pallas_src>

<mosaic_0001>
module attributes {stable_mosaic.version = 11 : i64} {
  func.func @kernel(%arg0: i32, %arg1: i32, %arg2: memref<8x128xf32, #tpu.memory_space<vmem>>, %arg3: memref<8x8xf32, #tpu.memory_space<vmem>>, %arg4: memref<8x256xf32, #tpu.memory_space<vmem>>, %arg5: memref<8x256xf32, #tpu.memory_space<vmem>>, %arg6: memref<8x128xf32, #tpu.memory_space<vmem>>) attributes {dimension_semantics = [#tpu.dimension_semantics<parallel>, #tpu.dimension_semantics<parallel>], iteration_bounds = array<i64: 1, 1>, scalar_prefetch = 0 : i64, scratch_operands = 0 : i64, tpu.core_type = #tpu.core_type<tc>, window_params = [{transform_indices = @transform_0, window_bounds = array<i64: 8, 128>}, {transform_indices = @transform_1, window_bounds = array<i64: 8, 8>}, {transform_indices = @transform_2, window_bounds = array<i64: 8, 256>}, {transform_indices = @transform_3, window_bounds = array<i64: 8, 256>}, {transform_indices = @transform_4, window_bounds = array<i64: 8, 128>}]} {
    %c0 = arith.constant 0 : index
    %c0_0 = arith.constant 0 : index
    %0 = vector.load %arg2[%c0, %c0_0] : memref<8x128xf32, #tpu.memory_space<vmem>>, vector<8x128xf32>
    %1 = vector.extract_strided_slice %0 {offsets = [0, 0], sizes = [8, 1], strides = [1, 1]} : vector<8x128xf32> to vector<8x1xf32>
    %2 = vector.extract_strided_slice %0 {offsets = [0, 1], sizes = [8, 1], strides = [1, 1]} : vector<8x128xf32> to vector<8x1xf32>
    %3 = vector.extract_strided_slice %0 {offsets = [0, 2], sizes = [8, 1], strides = [1, 1]} : vector<8x128xf32> to vector<8x1xf32>
    %c0_1 = arith.constant 0 : index
    %c0_2 = arith.constant 0 : index
    %4 = vector.load %arg4[%c0_1, %c0_2] : memref<8x256xf32, #tpu.memory_space<vmem>>, vector<8x256xf32>
    %c0_3 = arith.constant 0 : index
    %c0_4 = arith.constant 0 : index
    %5 = vector.load %arg5[%c0_3, %c0_4] : memref<8x256xf32, #tpu.memory_space<vmem>>, vector<8x256xf32>
    %6 = vector.broadcast %1 : vector<8x1xf32> to vector<8x256xf32>
    %7 = arith.mulf %6, %4 : vector<8x256xf32>
    %8 = vector.broadcast %2 : vector<8x1xf32> to vector<8x256xf32>
    %9 = arith.mulf %8, %5 : vector<8x256xf32>
    %10 = arith.addf %7, %9 : vector<8x256xf32>
    %c0_5 = arith.constant 0 : index
    %c0_6 = arith.constant 0 : index
    %11 = vector.load %arg3[%c0_5, %c0_6] : memref<8x8xf32, #tpu.memory_space<vmem>>, vector<8x8xf32>
    %cst = arith.constant dense<0.000000e+00> : vector<8x256xf32>
    %12 = tpu.matmul %11, %10, %cst {dimension_numbers = #tpu.dot_dimension_numbers<[1], [0], [0], [1], [0, 0, 1, 1], [], []>} : vector<8x8xf32>, vector<8x256xf32>, vector<8x256xf32> -> vector<8x256xf32>
    %13 = vector.broadcast %3 : vector<8x1xf32> to vector<8x256xf32>
    %14 = arith.addf %12, %13 : vector<8x256xf32>
    %15 = arith.subf %5, %14 : vector<8x256xf32>
    %16 = arith.mulf %15, %15 : vector<8x256xf32>
    %17 = vector.extract_strided_slice %16 {offsets = [0, 0], sizes = [8, 128], strides = [1, 1]} : vector<8x256xf32> to vector<8x128xf32>
    %18 = vector.extract_strided_slice %16 {offsets = [0, 128], sizes = [8, 128], strides = [1, 1]} : vector<8x256xf32> to vector<8x128xf32>
    %19 = arith.addf %17, %18 : vector<8x128xf32>
    %c0_7 = arith.constant 0 : index
    %c0_8 = arith.constant 0 : index
    %20 = vector.load %arg6[%c0_7, %c0_8] : memref<8x128xf32, #tpu.memory_space<vmem>>, vector<8x128xf32>
    tpu.vector_store %arg6[%c0_7, %c0_8], %19 {strides = array<i32>} : memref<8x128xf32, #tpu.memory_space<vmem>>, vector<8x128xf32>,
    return
  }
  func.func @transform_0(%arg0: i32, %arg1: i32) -> (i32, i32) {
    %c0_i32 = arith.constant 0 : i32
    %c0_i32_0 = arith.constant 0 : i32
    return %arg0, %c0_i32 : i32, i32
  }
  func.func @transform_1(%arg0: i32, %arg1: i32) -> (i32, i32) {
    %c0_i32 = arith.constant 0 : i32
    %c0_i32_0 = arith.constant 0 : i32
    return %arg0, %c0_i32 : i32, i32
  }
  func.func @transform_2(%arg0: i32, %arg1: i32) -> (i32, i32) {
    %c0_i32 = arith.constant 0 : i32
    return %arg0, %arg1 : i32, i32
  }
  func.func @transform_3(%arg0: i32, %arg1: i32) -> (i32, i32) {
    %c0_i32 = arith.constant 0 : i32
    return %arg0, %arg1 : i32, i32
  }
  func.func @transform_4(%arg0: i32, %arg1: i32) -> (i32, i32) {
    %c0_i32 = arith.constant 0 : i32
    return %arg0, %arg1 : i32, i32
  }
}

</mosaic_0001>

<bundles_post_ra>
// kernel: tpu_custom_call.1
= control target key start
LH: loop header
LB: loop body
LE: loop exit
PB: predicated region body
PF: predicated region fallthrough
CT: control target
= control target key end

     0   :  { %9 = vsyncpa [#allocation3], 0  ;;  %s414_s0 = inlined_call_operand.hbm [shape: f32[8,128], index: 0, kind: input, shape index: {}]   ;;  %s415_s1 = inlined_call_operand.hbm [shape: f32[8,8], index: 1, kind: input, shape index: {}]   ;;  %s416_s2 = inlined_call_operand.hbm [shape: f32[8,256], index: 2, kind: input, shape index: {}]   ;;  %s417_s3 = inlined_call_operand.hbm [shape: f32[8,256], index: 3, kind: input, shape index: {}]   ;;  %s418_s4 = inlined_call_operand.hbm [shape: f32[8,128], index: 4, kind: output, shape index: {}]  }
   0x1   :  { %10 = vsyncpa [#allocation6], 0 }
   0x2   :  { %11 = vsyncpa [#allocation9], 0 }
   0x3   :  { %12 = vsyncpa [#allocation4], 0  ;;  %s320_s15 = smov [#allocation5]   ;;  %s321_s17 = smov [#allocation2]  }
   0x4   :  { %s29_s16 = sshll.u32 %s320_s15, 4  ;;  %s19_s18 = sshll.u32 %s321_s17, 4  ;;  %s30_s16 = int_to_ptr.vmem [resolvable:$true] %s29_s16  ;;  %s20_s18 = int_to_ptr.vmem [resolvable:$true] %s19_s18 }
   0x5   :  { %s202_s21 = scalar_lea.hbm %s415_s1, 128 }
   0x6   :  { %p203_p0 = scmp.ne.s32.totalorder %s415_s1, %s202_s21  ;;  %p206_p1 = scmp.lt.u32.totalorder %s202_s21, %s415_s1 }
   0x8   :  { %p208_p2 = pnand %p206_p1, %p203_p0 }
   0xa   :  { %211 = shalt.err (!%p208_p2)
}
   0xb   :  { %s212_s26 = scalar_lea.vmem %s30_s16, 128  ;;  %p217_p4 = scmp.lt.s32.totalorder %s30_s16, %s30_s16 }
   0xc   :  { %p213_p3 = scmp.ne.s32.totalorder %s30_s16, %s212_s26  ;;  %p218_p5 = scmp.lt.s32.totalorder %s212_s26, %s212_s26 }
   0xe   :  { %p219_p6 = por %p218_p5, %p217_p4 }
  0x10   :  { %p220_p7 = pnand %p219_p6, %p213_p3 }
  0x12   :  { %223 = shalt.err (!%p220_p7)
}
  0x13   :  { %32 = dma.hbm_to_vmem [thread:$0]  %s415_s1, 128, %s30_s16, [#allocation6]  }
  0x14   :  { %s224_s5 = scalar_lea.hbm %s414_s0, 128 }
  0x15   :  { %p225_p8 = scmp.ne.s32.totalorder %s414_s0, %s224_s5  ;;  %p228_p9 = scmp.lt.u32.totalorder %s224_s5, %s414_s0 }
  0x17   :  { %p230_p10 = pnand %p228_p9, %p225_p8 }
  0x19   :  { %233 = shalt.err (!%p230_p10)
}
  0x1a   :  { %s234_s10 = scalar_lea.vmem %s20_s18, 128  ;;  %p239_p12 = scmp.lt.s32.totalorder %s20_s18, %s20_s18 }
  0x1b   :  { %p235_p11 = scmp.ne.s32.totalorder %s20_s18, %s234_s10  ;;  %p240_p13 = scmp.lt.s32.totalorder %s234_s10, %s234_s10 }
  0x1d   :  { %p241_p0 = por %p240_p13, %p239_p12 }
  0x1f   :  { %p242_p1 = pnand %p241_p0, %p235_p11 }
  0x21   :  { %245 = shalt.err (!%p242_p1)
}
  0x22   :  { %22 = dma.hbm_to_vmem [thread:$0]  %s414_s0, 128, %s20_s18, [#allocation3]  }
  0x23   :  { %s322_s12 = smov [#allocation7]   ;;  %s323_s14 = smov [#allocation8]  }
  0x24   :  { %s39_s13 = sshll.u32 %s322_s12, 4  ;;  %s49_s15 = sshll.u32 %s323_s14, 4  ;;  %s40_s13 = int_to_ptr.vmem [resolvable:$true] %s39_s13  ;;  %s50_s15 = int_to_ptr.vmem [resolvable:$true] %s49_s15 }
  0x25   :  { %s246_s19 = scalar_lea.hbm %s416_s2, 256 }
  0x26   :  { %p247_p2 = scmp.ne.s32.totalorder %s416_s2, %s246_s19  ;;  %p250_p3 = scmp.lt.u32.totalorder %s246_s19, %s416_s2 }
  0x28   :  { %p252_p4 = pnand %p250_p3, %p247_p2 }
  0x2a   :  { %255 = shalt.err (!%p252_p4)
}
  0x2b   :  { %s256_s0 = scalar_lea.vmem %s40_s13, 256  ;;  %p261_p6 = scmp.lt.s32.totalorder %s40_s13, %s40_s13 }
  0x2c   :  { %p257_p5 = scmp.ne.s32.totalorder %s40_s13, %s256_s0  ;;  %p262_p7 = scmp.lt.s32.totalorder %s256_s0, %s256_s0 }
  0x2e   :  { %p263_p8 = por %p262_p7, %p261_p6 }
  0x30   :  { %p264_p9 = pnand %p263_p8, %p257_p5 }
  0x32   :  { %267 = shalt.err (!%p264_p9)
}
  0x33   :  { %42 = dma.hbm_to_vmem [thread:$0]  %s416_s2, 256, %s40_s13, [#allocation6]  }
  0x34   :  { %s268_s27 = scalar_lea.hbm %s417_s3, 256 }
  0x35   :  { %p269_p10 = scmp.ne.s32.totalorder %s417_s3, %s268_s27  ;;  %p272_p11 = scmp.lt.u32.totalorder %s268_s27, %s417_s3 }
  0x37   :  { %p274_p12 = pnand %p272_p11, %p269_p10 }
  0x39   :  { %277 = shalt.err (!%p274_p12)
}
  0x3a   :  { %s278_s6 = scalar_lea.vmem %s50_s15, 256  ;;  %p283_p0 = scmp.lt.s32.totalorder %s50_s15, %s50_s15 }
  0x3b   :  { %p279_p13 = scmp.ne.s32.totalorder %s50_s15, %s278_s6  ;;  %p284_p1 = scmp.lt.s32.totalorder %s278_s6, %s278_s6 }
  0x3d   :  { %p285_p2 = por %p284_p1, %p283_p0 }
  0x3f   :  { %p286_p3 = pnand %p285_p2, %p279_p13 }
  0x41   :  { %289 = shalt.err (!%p286_p3)
}
  0x42   :  { %52 = dma.hbm_to_vmem [thread:$0]  %s417_s3, 256, %s50_s15, [#allocation9]  }
  0x43   :  { %312 = dma.done.wait [#allocation3], 128  }
  0x44   :  { %313 = vsyncadd [#allocation3], 4294967168 }
  0x45   :  { %314 = dma.done.wait [#allocation6], 384  }
  0x46   :  { %315 = vsyncadd [#allocation6], 4294966912 }
  0x47   :  { %316 = dma.done.wait [#allocation9], 256  }
  0x48   :  { %317 = vsyncadd [#allocation9], 4294967040  ;;  %v324_v0 = vmov 0   ;;  %v65_v1 = vld [vmem:[#allocation2] sm:$0xff]  ;;  %v325_v2 = vmov 1   ;;  %v326_v3 = vmov 0.0  }
  0x49   :  { %198 = vset.pattern.permute.xlu0 %v324_v0  ;;  %158 = vmatprep.mubr.f32.mxu0 %v326_v3  ;;  %v327_v4 = vmov 2   ;;  %v66_v6 = vld [vmem:[#allocation7] sm:$0xff]  ;;  %v67_v7 = vld [vmem:[#allocation7 + $0x8] sm:$0xff]  ;;  %v68_v8 = vld [vmem:[#allocation8] sm:$0xff]  ;;  %vm90_vm0 = vcmask 64512   ;;  %s328_s3 = smov [#allocation10]  }
  0x4a   :  { %72 = vperm.xlu0 %198, %v65_v1   ;;  %200 = vset.pattern.permute.xlu1 %v327_v4  ;;  %v69_v9 = vld [vmem:[#allocation8 + $0x8] sm:$0xff]  ;;  %s177_s8 = sshll.u32 %s328_s3, 4  ;;  %s178_s8 = int_to_ptr.vmem [resolvable:$true] %s177_s8 }
  0x4b   :  { %87 = vperm.xlu1 %200, %v65_v1   ;;  %v85_v17 = vld [vmem:[#allocation5] sm:$0xff]  ;;  %s290_s9 = scalar_lea.vmem %s178_s8, 128  ;;  %p295_p5 = scmp.lt.s32.totalorder %s178_s8, %s178_s8 }
  0x4c   :  { %p291_p4 = scmp.ne.s32.totalorder %s178_s8, %s290_s9  ;;  %p296_p6 = scmp.lt.s32.totalorder %s290_s9, %s290_s9 }
  0x4e   :  { %199 = vset.pattern.permute.xlu0 %v325_v2  ;;  %p297_p7 = por %p296_p6, %p295_p5 }
  0x4f   :  { %78 = vperm.xlu0 %199, %v65_v1  }
  0x50   :  { %p298_p8 = pnand %p297_p7, %p291_p4 }
  0x53   :  { %201 = vset.pattern.permute.xlu0 %v327_v4 }
  0xc9   :  { %v73_v5 = vpop.permute.xlu0 %72 }
  0xca   :  { %v75_v11 = vmul.f32 %v73_v5, %v66_v6  ;;  %v76_v12 = vmul.f32 %v73_v5, %v67_v7  ;;  %v88_v18 = vpop.permute.xlu1 %87 }
  0xce   :  { %v79_v10 = vpop.permute.xlu0 %78 }
  0xcf   :  { %v81_v13 = vmul.f32 %v79_v10, %v68_v8  ;;  %v82_v14 = vmul.f32 %v79_v10, %v69_v9 }
  0xd1   :  { %v84_v15 = vadd.f32 %v82_v14, %v76_v12  ;;  %v83_v16 = vadd.f32 %v81_v13, %v75_v11 }
  0xd3   :  { %94 = vmatprep.subr.mxu0 %v84_v15 }
  0xd4   :  { %95 = vmatpush1.msra.mxu0 %v83_v16 }
  0xd5   :  { %188 = vmatmul.mubr.msk.f32.vlgmr.msra.gmra.mrb[0].mxu0 %vm90_vm0, %v85_v17 }
 0x1a8   :  { %v160_v19 = vpop.f32.mrb[0].mxu0 }
 0x1a9   :  { %v161_v20 = vadd.f32 %v160_v19, %v88_v18  ;;  %v162_v21 = vpop.f32.mrb[1].mxu0 }
 0x1aa   :  { %v163_v22 = vadd.f32 %v162_v21, %v88_v18 }
 0x1ab   :  { %v165_v23 = vsub.f32 %v68_v8, %v161_v20 }
 0x1ac   :  { %v166_v24 = vsub.f32 %v69_v9, %v163_v22 }
 0x1ad   :  { %v167_v25 = vmul.f32 %v165_v23, %v165_v23 }
 0x1ae   :  { %v168_v26 = vmul.f32 %v166_v24, %v166_v24 }
 0x1b0   :  { %v169_v27 = vadd.f32 %v168_v26, %v167_v25 }
 0x1b2   :  { %170 = vst [vmem:[#allocation10] sm:$0xff] %v169_v27 }
 0x1b3   :  { %301 = shalt.err (!%p298_p8)
}
 0x1b4   :  { %s302_s11 = scalar_lea.hbm %s418_s4, 128 }
 0x1b5   :  { %p303_p9 = scmp.ne.s32.totalorder %s418_s4, %s302_s11  ;;  %p306_p10 = scmp.lt.u32.totalorder %s302_s11, %s418_s4 }
 0x1b7   :  { %p308_p11 = pnand %p306_p10, %p303_p9 }
 0x1b9   :  { %311 = shalt.err (!%p308_p11)
}
 0x1ba   :  { %180 = dma.vmem_to_hbm [thread:$0]  %s178_s8, 128, %s418_s4, [#allocation4]  }
 0x1bb   :  { %318 = dma.done.wait [#allocation4], 128  }
 0x1bc   :  { %319 = vsyncadd [#allocation4], 4294967168 }
 0x1bd   :  { %184 = vsyncpa [#allocation3], 1 }
 0x1be   :  { %185 = vsyncpa [#allocation6], 1 }
 0x1bf   :  { %186 = vsyncpa [#allocation9], 1 }
 0x1c0   :  { %187 = vsyncpa [#allocation4], 1 }

</bundles_post_ra>
